<compile_context>
chip_gen: v7x
topology: tpu7x:2x2x1
jax: 0.10.0
libtpu: 0.0.40
codegen_flags: <defaults>
</compile_context>

<pallas_src>
import functools

import jax
import jax.numpy as jnp
from jax import lax
from jax.experimental import pallas as pl
from jax.experimental.pallas import tpu as pltpu


def _cdiv(a, b):
    return -(-a // b)


def _sublane_pack(dtype):
    return {4: 8, 2: 16, 1: 32}.get(jnp.dtype(dtype).itemsize, 8)


def _vmem_cap_bytes():
    cap = 64 << 20  # conservative default: v7x per-TensorCore VMEM
    try:
        info = pltpu.get_tpu_info()
        cap = int(getattr(info, "vmem_capacity_bytes", cap))
    except Exception:
        pass
    return (cap * 3) // 4  # 25% headroom


def _footprint_bytes(rows, cols, itemsize):
    # 2 inputs x 2 double-buffers in the input dtype, plus ~6 f32-tile-sized
    # live temporaries (t, p, weight, err, werr, ... conservative post-fusion),
    # plus fixed slack for the output tile / compiler scratch.
    tile = rows * cols * itemsize
    f32_tile = rows * cols * 4
    return 4 * tile + 6 * f32_tile + (2 << 20)


def _partial_to_tile(partial):
    """Place a scalar partial sum at [0, 0] of an (8, 128) f32 output tile."""
    r = lax.broadcasted_iota(jnp.int32, (8, 128), 0)
    c = lax.broadcasted_iota(jnp.int32, (8, 128), 1)
    return jnp.where((r == 0) & (c == 0), partial, jnp.float32(0.0))


def _wmape_rows_kernel(pred_ref, target_ref, out_ref, *, batch, tb,
                       epsilon, threshold_factor, weight_factor, approx_recip):
    """Path A: one grid step == `tb` whole samples (block last dim == full L)."""
    t = target_ref[...].astype(jnp.float32)   # (tb, L)
    p = pred_ref[...].astype(jnp.float32)
    rows = t.shape[0]

    # Per-sample threshold: exact max over the whole sample (no lane padding).
    th = jnp.max(t, axis=1, keepdims=True) * jnp.float32(threshold_factor)
    weight = jnp.where(t > th, jnp.float32(weight_factor), jnp.float32(1.0))

    diff = t - p
    denom = t + jnp.float32(epsilon)
    if approx_recip:
        err = jnp.abs(diff * pl.reciprocal(denom, approx=True))
    else:
        err = jnp.abs(diff / denom)
    werr = err * weight

    if batch % tb != 0:
        # Ragged last batch block: rows beyond (batch - i*tb) are OOB garbage;
        # a select (not multiply) keeps any NaN/Inf there from propagating.
        i = pl.program_id(0)
        row_id = lax.broadcasted_iota(jnp.int32, (rows, 1), 0)
        werr = jnp.where(row_id < (batch - i * tb), werr, jnp.float32(0.0))

    out_ref[...] = _partial_to_tile(jnp.sum(werr))


def _wmape_strip_kernel(pred_ref, target_ref, th_ref, out_ref, *, batch, tb,
                        length, sl, epsilon, weight_factor, approx_recip):
    """Path B: strip-tiled (rows x lanes) pass; per-sample threshold fed in."""
    t = target_ref[...].astype(jnp.float32)   # (tb, sl)
    p = pred_ref[...].astype(jnp.float32)
    rows, lanes = t.shape
    th = th_ref[...]                          # (tb, 1) f32, already scaled

    weight = jnp.where(t > th, jnp.float32(weight_factor), jnp.float32(1.0))
    diff = t - p
    denom = t + jnp.float32(epsilon)
    if approx_recip:
        err = jnp.abs(diff * pl.reciprocal(denom, approx=True))
    else:
        err = jnp.abs(diff / denom)
    werr = err * weight

    mask = None
    if batch % tb != 0:
        bi = pl.program_id(0)
        row_id = lax.broadcasted_iota(jnp.int32, (rows, 1), 0)
        mask = row_id < (batch - bi * tb)
    if length % sl != 0:
        li = pl.program_id(1)
        col_id = lax.broadcasted_iota(jnp.int32, (1, lanes), 1)
        lane_mask = col_id < (length - li * sl)
        mask = lane_mask if mask is None else (mask & lane_mask)
    if mask is not None:
        werr = jnp.where(mask, werr, jnp.float32(0.0))

    out_ref[...] = _partial_to_tile(jnp.sum(werr))


def weighted_mape_loss(pred, target, *, epsilon=1e-6, ignore_index=None,
                       threshold_mode='max', threshold_factor=0.9,
                       weight_factor=2.0, target_tile_bytes=4 << 20,
                       use_approx_reciprocal=False, force_strip=False):
    """JAX/Pallas equivalent of WeightedMAPELoss.forward (defaults of the module)."""
    if threshold_mode != 'max':
        # TODO(synk): 'quantile' threshold_mode needs a per-sample quantile
        # (sort) which has no clean Pallas equivalent; only 'max' is implemented.
        raise NotImplementedError("Only threshold_mode='max' is implemented.")
    if ignore_index is not None:
        # TODO(synk): ignore_index masking not implemented (module default is None).
        raise NotImplementedError("ignore_index is not supported.")

    # Squeeze channel dim (C == 1), matching the PyTorch module.
    if pred.ndim == 4 and pred.shape[1] == 1:
        pred = pred[:, 0]
    if target.ndim == 4 and target.shape[1] == 1:
        target = target[:, 0]

    B = target.shape[0]
    L = 1
    for d in target.shape[1:]:
        L *= d
    pred2 = pred.reshape(B, L)       # lane-dense (B, L); NO host-side padding
    target2 = target.reshape(B, L)

    itemsize = max(jnp.dtype(pred2.dtype).itemsize, jnp.dtype(target2.dtype).itemsize)
    pack = max(_sublane_pack(pred2.dtype), _sublane_pack(target2.dtype))
    cap = _vmem_cap_bytes()

    min_tb = B if B <= pack else pack
    rows_path_ok = _footprint_bytes(min_tb, L, itemsize) <= cap

    if rows_path_ok and not force_strip:
        # ---- Path A: whole samples per block; per-sample max computed in-kernel.
        row_bytes = L * itemsize
        row_resident = L * (4 * itemsize + 24)
        budget_rows = max(1, target_tile_bytes // row_bytes)
        max_rows_by_vmem = max(1, (cap - (2 << 20)) // row_resident)
        tb = min(budget_rows, max_rows_by_vmem, _cdiv(B, 2))   # >=2 blocks if possible
        tb = (tb // pack) * pack                               # sublane-packing aligned
        if tb <= 0:
            tb = B if B <= pack else pack                      # full-dim or one packed row-group
        num_blocks = _cdiv(B, tb)

        kernel = functools.partial(
            _wmape_rows_kernel, batch=B, tb=tb, epsilon=float(epsilon),
            threshold_factor=float(threshold_factor),
            weight_factor=float(weight_factor),
            approx_recip=bool(use_approx_reciprocal))

        vmem_limit = int(min(max(_footprint_bytes(tb, L, itemsize), 32 << 20), cap))
        partials = pl.pallas_call(
            kernel,
            out_shape=jax.ShapeDtypeStruct((num_blocks * 8, 128), jnp.float32),
            grid=(num_blocks,),
            in_specs=[pl.BlockSpec((tb, L), lambda i: (i, 0)),   # pred
                      pl.BlockSpec((tb, L), lambda i: (i, 0))],  # target
            out_specs=pl.BlockSpec((8, 128), lambda i: (i, 0)),
            compiler_params=pltpu.CompilerParams(
                dimension_semantics=("parallel",),
                vmem_limit_bytes=vmem_limit),
        )(pred2, target2)
    else:
        # ---- Path B: samples too large for whole-row blocks -> strip tiling.
        # Per-sample threshold computed once outside (one extra memory-bound read
        # of target) and fed in as a tiny (B, 1) f32 side input.
        th = jnp.max(target2, axis=1, keepdims=True).astype(jnp.float32)
        th = th * jnp.float32(threshold_factor)

        tbb = B if B <= pack else pack
        per_col_resident = tbb * (4 * itemsize + 24)
        sl = min(max(1, target_tile_bytes // (tbb * itemsize)),
                 max(128, (cap - (2 << 20)) // per_col_resident))
        sl = max(128, (sl // 128) * 128)
        sl = min(sl, L)                      # full-dim last block is also legal
        nb = _cdiv(B, tbb)
        nl = _cdiv(L, sl)

        kernel = functools.partial(
            _wmape_strip_kernel, batch=B, tb=tbb, length=L, sl=sl,
            epsilon=float(epsilon), weight_factor=float(weight_factor),
            approx_recip=bool(use_approx_reciprocal))

        vmem_limit = int(min(max(_footprint_bytes(tbb, sl, itemsize), 32 << 20), cap))
        partials = pl.pallas_call(
            kernel,
            out_shape=jax.ShapeDtypeStruct((nb * 8, nl * 128), jnp.float32),
            grid=(nb, nl),
            in_specs=[pl.BlockSpec((tbb, sl), lambda bi, li: (bi, li)),  # pred
                      pl.BlockSpec((tbb, sl), lambda bi, li: (bi, li)),  # target
                      pl.BlockSpec((tbb, 1), lambda bi, li: (bi, 0))],   # threshold
            out_specs=pl.BlockSpec((8, 128), lambda bi, li: (bi, li)),
            compiler_params=pltpu.CompilerParams(
                dimension_semantics=("parallel", "arbitrary"),
                vmem_limit_bytes=vmem_limit),
        )(pred2, target2, th)

    # weighted_error.mean() over the ORIGINAL B*H*W elements.
    total = jnp.sum(partials)
    return total / jnp.float32(B * L)


def _reference_loss(pred, target, *, epsilon=1e-6, threshold_factor=0.9,
                    weight_factor=2.0):
    """Pure-JAX reference of the PyTorch forward, for sanity checks."""
    if pred.ndim == 4 and pred.shape[1] == 1:
        pred = pred[:, 0]
    if target.ndim == 4 and target.shape[1] == 1:
        target = target[:, 0]
    pred = pred.astype(jnp.float32)
    target = target.astype(jnp.float32)
    B = target.shape[0]
    th = jnp.max(target.reshape(B, -1), axis=1) * threshold_factor
    th = th.reshape((B,) + (1,) * (target.ndim - 1))
    weight = (target > th).astype(jnp.float32) * (weight_factor - 1.0) + 1.0
    err = jnp.abs((target - pred) / (target + epsilon))
    return jnp.mean(err * weight)


if __name__ == "__main__":
    key = jax.random.PRNGKey(0)
    k1, k2, k3, k4, k5, k6 = jax.random.split(key, 6)

    # --- Test 1: f32, small batch, whole batch in a single full-dim block.
    B, C, H, W = 2, 1, 16, 16
    t1 = jax.random.uniform(k1, (B, C, H, W), jnp.float32, 0.1, 2.0)
    p1 = t1 + 0.1 * jax.random.normal(k2, (B, C, H, W), jnp.float32)
    loss1 = jax.block_until_ready(weighted_mape_loss(p1, t1))
    ref1 = _reference_loss(p1, t1)
    assert jnp.allclose(loss1, ref1, rtol=1e-5, atol=1e-6), (loss1, ref1)

    # --- Test 2: bf16 inputs, non-128-multiple sample length (12*12=144),
    #             multi-block "parallel" grid with a ragged, in-kernel-masked
    #             last batch block (TB aligned to bf16's 16-sublane packing).
    B2, H2, W2 = 20, 12, 12
    t2 = jax.random.uniform(k3, (B2, 1, H2, W2), jnp.float32, 0.1, 2.0)
    p2 = t2 + 0.1 * jax.random.normal(k4, (B2, 1, H2, W2), jnp.float32)
    t2b, p2b = t2.astype(jnp.bfloat16), p2.astype(jnp.bfloat16)
    loss2 = jax.block_until_ready(
        weighted_mape_loss(p2b, t2b, target_tile_bytes=2048))
    ref2 = _reference_loss(p2b, t2b)
    assert jnp.allclose(loss2, ref2, rtol=1e-4, atol=1e-5), (loss2, ref2)

    # --- Test 3: strip-tiled big-sample path, forced at small scale:
    #             2-D grid, ragged batch AND lane strips, threshold fed as input.
    B3, H3, W3 = 10, 12, 12
    t3 = jax.random.uniform(k5, (B3, 1, H3, W3), jnp.float32, 0.1, 2.0)
    p3 = t3 + 0.1 * jax.random.normal(k6, (B3, 1, H3, W3), jnp.float32)
    loss3 = jax.block_until_ready(
        weighted_mape_loss(p3, t3, target_tile_bytes=4096, force_strip=True))
    ref3 = _reference_loss(p3, t3)
    assert jnp.allclose(loss3, ref3, rtol=1e-5, atol=1e-6), (loss3, ref3)

    # --- Test 4: approximate-reciprocal (EUP) variant, loose tolerance.
    loss4 = jax.block_until_ready(
        weighted_mape_loss(p1, t1, use_approx_reciprocal=True))
    assert jnp.allclose(loss4, ref1, rtol=5e-2, atol=1e-3), (loss4, ref1)

    print("KERNEL_OK")
</pallas_src>

<mosaic_0001>
module attributes {stable_mosaic.version = 11 : i64} {
  func.func @_wmape_rows_kernel(%arg0: i32, %arg1: memref<2x256xf32, #tpu.memory_space<vmem>>, %arg2: memref<2x256xf32, #tpu.memory_space<vmem>>, %arg3: memref<8x128xf32, #tpu.memory_space<vmem>>) attributes {dimension_semantics = [#tpu.dimension_semantics<parallel>], iteration_bounds = array<i64: 1>, scalar_prefetch = 0 : i64, scratch_operands = 0 : i64, tpu.core_type = #tpu.core_type<tc>, window_params = [{transform_indices = @transform_0, window_bounds = array<i64: 2, 256>}, {transform_indices = @transform_1, window_bounds = array<i64: 2, 256>}, {transform_indices = @transform_2, window_bounds = array<i64: 8, 128>}]} {
    %c0 = arith.constant 0 : index
    %c0_0 = arith.constant 0 : index
    %0 = vector.load %arg2[%c0, %c0_0] : memref<2x256xf32, #tpu.memory_space<vmem>>, vector<2x256xf32>
    %c0_1 = arith.constant 0 : index
    %c0_2 = arith.constant 0 : index
    %1 = vector.load %arg1[%c0_1, %c0_2] : memref<2x256xf32, #tpu.memory_space<vmem>>, vector<2x256xf32>
    %cst = arith.constant dense<0xFF800000> : vector<2xf32>
    %2 = vector.multi_reduction <maximumf>, %0, %cst [1] : vector<2x256xf32> to vector<2xf32>
    %3 = vector.shape_cast %2 : vector<2xf32> to vector<2x1xf32>
    %cst_3 = arith.constant 0.899999976 : f32
    %4 = vector.broadcast %cst_3 : f32 to vector<2x1xf32>
    %5 = arith.mulf %3, %4 : vector<2x1xf32>
    %6 = vector.broadcast %5 : vector<2x1xf32> to vector<2x256xf32>
    %7 = arith.cmpf ogt, %0, %6 : vector<2x256xf32>
    %cst_4 = arith.constant 2.000000e+00 : f32
    %cst_5 = arith.constant 1.000000e+00 : f32
    %8 = vector.broadcast %cst_4 : f32 to vector<2x256xf32>
    %9 = vector.broadcast %cst_5 : f32 to vector<2x256xf32>
    %10 = arith.select %7, %8, %9 : vector<2x256xi1>, vector<2x256xf32>
    %11 = arith.subf %0, %1 : vector<2x256xf32>
    %cst_6 = arith.constant 9.99999997E-7 : f32
    %12 = vector.broadcast %cst_6 : f32 to vector<2x256xf32>
    %13 = arith.addf %0, %12 : vector<2x256xf32>
    %14 = arith.divf %11, %13 : vector<2x256xf32>
    %15 = math.absf %14 : vector<2x256xf32>
    %16 = arith.mulf %15, %10 : vector<2x256xf32>
    %17 = vector.shape_cast %16 : vector<2x256xf32> to vector<1x2x256xf32>
    %cst_7 = arith.constant dense<0.000000e+00> : vector<1xf32>
    %18 = vector.multi_reduction <add>, %17, %cst_7 [1, 2] : vector<1x2x256xf32> to vector<1xf32>
    %19 = vector.shape_cast %18 : vector<1xf32> to vector<1x1x1xf32>
    %20 = vector.extract %19[0, 0, 0] : f32 from vector<1x1x1xf32>
    %21 = tpu.iota {dimensions = array<i32: 0>} : vector<8x128xi32>
    %22 = tpu.iota {dimensions = array<i32: 1>} : vector<8x128xi32>
    %c0_i32 = arith.constant 0 : i32
    %23 = vector.broadcast %c0_i32 : i32 to vector<8x128xi32>
    %24 = arith.cmpi eq, %21, %23 : vector<8x128xi32>
    %c0_i32_8 = arith.constant 0 : i32
    %25 = vector.broadcast %c0_i32_8 : i32 to vector<8x128xi32>
    %26 = arith.cmpi eq, %22, %25 : vector<8x128xi32>
    %27 = arith.andi %24, %26 : vector<8x128xi1>
    %cst_9 = arith.constant 0.000000e+00 : f32
    %28 = vector.broadcast %20 : f32 to vector<8x128xf32>
    %29 = vector.broadcast %cst_9 : f32 to vector<8x128xf32>
    %30 = arith.select %27, %28, %29 : vector<8x128xi1>, vector<8x128xf32>
    %c0_10 = arith.constant 0 : index
    %c0_11 = arith.constant 0 : index
    %31 = vector.load %arg3[%c0_10, %c0_11] : memref<8x128xf32, #tpu.memory_space<vmem>>, vector<8x128xf32>
    tpu.vector_store %arg3[%c0_10, %c0_11], %30 {strides = array<i32>} : memref<8x128xf32, #tpu.memory_space<vmem>>, vector<8x128xf32>,
    return
  }
  func.func @transform_0(%arg0: i32) -> (i32, i32) {
    %c0_i32 = arith.constant 0 : i32
    %c0_i32_0 = arith.constant 0 : i32
    return %arg0, %c0_i32 : i32, i32
  }
  func.func @transform_1(%arg0: i32) -> (i32, i32) {
    %c0_i32 = arith.constant 0 : i32
    %c0_i32_0 = arith.constant 0 : i32
    return %arg0, %c0_i32 : i32, i32
  }
  func.func @transform_2(%arg0: i32) -> (i32, i32) {
    %c0_i32 = arith.constant 0 : i32
    %c0_i32_0 = arith.constant 0 : i32
    return %arg0, %c0_i32 : i32, i32
  }
}

</mosaic_0001>

<bundles_post_ra>
// kernel: tpu_custom_call.1
= control target key start
LH: loop header
LB: loop body
LE: loop exit
PB: predicated region body
PF: predicated region fallthrough
CT: control target
= control target key end

     0   :  { %7 = vsyncpa [#allocation3], 0  ;;  %s265_s0 = inlined_call_operand.hbm [shape: f32[2,256], index: 0, kind: input, shape index: {}]   ;;  %s266_s1 = inlined_call_operand.hbm [shape: f32[2,256], index: 1, kind: input, shape index: {}]   ;;  %s267_s2 = inlined_call_operand.hbm [shape: f32[8,128], index: 2, kind: output, shape index: {}]  }
   0x1   :  { %8 = vsyncpa [#allocation6], 0 }
   0x2   :  { %9 = vsyncpa [#allocation4], 0  ;;  %s204_s9 = smov [#allocation2]   ;;  %s205_s11 = smov [#allocation5]  }
   0x3   :  { %s16_s10 = sshll.u32 %s204_s9, 4  ;;  %s26_s12 = sshll.u32 %s205_s11, 4  ;;  %s17_s10 = int_to_ptr.vmem [resolvable:$true] %s16_s10  ;;  %s27_s12 = int_to_ptr.vmem [resolvable:$true] %s26_s12 }
   0x4   :  { %s132_s15 = scalar_lea.hbm %s265_s0, 64 }
   0x5   :  { %p133_p0 = scmp.ne.s32.totalorder %s265_s0, %s132_s15  ;;  %p136_p1 = scmp.lt.u32.totalorder %s132_s15, %s265_s0 }
   0x7   :  { %p138_p2 = pnand %p136_p1, %p133_p0 }
   0x9   :  { %141 = shalt.err (!%p138_p2)
}
   0xa   :  { %s142_s20 = scalar_lea.vmem %s17_s10, 64  ;;  %p147_p4 = scmp.lt.s32.totalorder %s17_s10, %s17_s10 }
   0xb   :  { %p143_p3 = scmp.ne.s32.totalorder %s17_s10, %s142_s20  ;;  %p148_p5 = scmp.lt.s32.totalorder %s142_s20, %s142_s20 }
   0xd   :  { %p149_p6 = por %p148_p5, %p147_p4 }
   0xf   :  { %p150_p7 = pnand %p149_p6, %p143_p3 }
  0x11   :  { %153 = shalt.err (!%p150_p7)
}
  0x12   :  { %19 = dma.hbm_to_vmem [thread:$0]  %s265_s0, 64, %s17_s10, [#allocation3]  }
  0x13   :  { %s154_s25 = scalar_lea.hbm %s266_s1, 64 }
  0x14   :  { %p155_p8 = scmp.ne.s32.totalorder %s266_s1, %s154_s25  ;;  %p158_p9 = scmp.lt.u32.totalorder %s154_s25, %s266_s1 }
  0x16   :  { %p160_p10 = pnand %p158_p9, %p155_p8 }
  0x18   :  { %163 = shalt.err (!%p160_p10)
}
  0x19   :  { %s164_s30 = scalar_lea.vmem %s27_s12, 64  ;;  %p169_p12 = scmp.lt.s32.totalorder %s27_s12, %s27_s12 }
  0x1a   :  { %p165_p11 = scmp.ne.s32.totalorder %s27_s12, %s164_s30  ;;  %p170_p13 = scmp.lt.s32.totalorder %s164_s30, %s164_s30 }
  0x1c   :  { %p171_p0 = por %p170_p13, %p169_p12 }
  0x1e   :  { %p172_p1 = pnand %p171_p0, %p165_p11 }
  0x20   :  { %175 = shalt.err (!%p172_p1)
}
  0x21   :  { %29 = dma.hbm_to_vmem [thread:$0]  %s266_s1, 64, %s27_s12, [#allocation6]  }
  0x22   :  { %198 = dma.done.wait [#allocation3], 64  }
  0x23   :  { %199 = vsyncadd [#allocation3], 4294967232 }
  0x24   :  { %200 = dma.done.wait [#allocation6], 64  }
  0x25   :  { %201 = vsyncadd [#allocation6], 4294967232  ;;  %v42_v0 = vlaneseq  ;;  %v206_v1 = vmov 1983009808   ;;  %v36_v6 = vld [vmem:[#allocation5] sm:$0xf] }
  0x26   :  { %v40_v2 = vunpack.c.l.s4 %v206_v1  ;;  %vm49_vm0 = vcmask 1041408   ;;  %v68_v12 = vadd.f32 1e-06, %v36_v6  ;;  %v207_v13 = vmov 269488144   ;;  %s209_s1 = smov [#allocation7]  }
  0x27   :  { %v43_v3 = vshrl.u32 %v42_v0, 7  ;;  %v58_v14 = vunpack.c.l.s4 %v207_v13  ;;  %v37_v15 = vld [vmem:[#allocation2] sm:$0xf]  ;;  %v208_v25 = vmov 1.0   ;;  %v99_v40 = vand.u32 127, %v42_v0  ;;  %s112_s4 = sshll.u32 %s209_s1, 4  ;;  %s113_s4 = int_to_ptr.vmem [resolvable:$true] %s112_s4 }
  0x28   :  { %v41_v4 = vunpack.c.0.s8 %v40_v2  ;;  %130 = vrcp.f32 %v68_v12  ;;  %v67_v17 = vsub.f32 %v36_v6, %v37_v15  ;;  %s176_s6 = scalar_lea.vmem %s113_s4, 128  ;;  %p181_p3 = scmp.lt.s32.totalorder %s113_s4, %s113_s4 }
  0x29   :  { %v59_v16 = vunpack.c.0.s8 %v58_v14  ;;  %vm100_vm2 = vcmp.eq.s32.totalorder %v43_v3, 0  ;;  %vm101_vm3 = vcmp.eq.s32.totalorder %v99_v40, 0  ;;  %p177_p2 = scmp.ne.s32.totalorder %s113_s4, %s176_s6  ;;  %p182_p4 = scmp.lt.s32.totalorder %s176_s6, %s176_s6 }
  0x2a   :  { %v44_v5 = vsub.s32 %v41_v4, %v43_v3  ;;  %vm102_vm4 = vmand %vm100_vm2, %vm101_vm3 }
  0x2b   :  { %v62_v19 = vsub.s32 %v59_v16, %v43_v3  ;;  %p183_p5 = por %p182_p4, %p181_p3 }
  0x2c   :  { %v45_v7 = vrot.slane %v36_v6, %v44_v5 }
  0x2d   :  { %p184_p6 = pnand %p183_p5, %p177_p2 }
  0x2e   :  { %v46_v8 = vcombine.high %v45_v7, %v45_v7  ;;  %v50_v9 = vsel %vm49_vm0, %v45_v7, -inf }
  0x30   :  { %v51_v10 = vsel %vm49_vm0, %v46_v8, -inf }
  0x31   :  { %v52_v11 = vmax.f32 %v50_v9, %v51_v10 }
  0x32   :  { %v131_v18 = vpop.eup %130 }
  0x33   :  { %53 = vmax.xlane.f32.xlu0 %v52_v11  ;;  %v70_v20 = vmul.f32 %v131_v18, %v67_v17 }
  0x35   :  { %v71_v24 = vand.u32 2147483647, %v70_v20 }
  0xc0   :  { %v54_v21 = vpop.xlane.xlu0 %53 }
  0xc1   :  { %v55_v22 = vmul.f32 0.9, %v54_v21 }
  0xc3   :  { %v63_v23 = vrot.slane %v55_v22, %v62_v19 }
  0xc5   :  { %vm65_vm1 = vcmp.gt.f32.partialorder %v36_v6, %v63_v23 }
  0xc6   :  { %v66_v26 = vsel %vm65_vm1, 2.0, %v208_v25 }
  0xc7   :  { %v72_v27 = vmul.f32 %v71_v24, %v66_v26 }
  0xc9   :  { %v80_v28 = vrot.slane %v72_v27, %v44_v5 }
  0xcb   :  { %v81_v29 = vcombine.high %v80_v28, %v80_v28  ;;  %v84_v30 = vsel %vm49_vm0, %v80_v28, 0.0 }
  0xcd   :  { %v85_v31 = vsel %vm49_vm0, %v81_v29, 0.0 }
  0xce   :  { %v86_v32 = vadd.f32 %v85_v31, %v84_v30 }
  0xd0   :  { %87 = vadd.xlane.f32.xlu0 %v86_v32 }
 0x15d   :  { %v88_v33 = vpop.xlane.xlu0 %87 }
 0x15e   :  { %v89_v34 = vrot.slane %v88_v33, 4 }
 0x160   :  { %v90_v35 = vadd.f32 %v89_v34, %v88_v33 }
 0x162   :  { %v91_v36 = vrot.slane %v90_v35, 2 }
 0x164   :  { %v92_v37 = vadd.f32 %v91_v36, %v90_v35 }
 0x166   :  { %v93_v38 = vrot.slane %v92_v37, 1 }
 0x168   :  { %v94_v39 = vadd.f32 %v93_v38, %v92_v37 }
 0x16a   :  { %122 = vpush %v94_v39 }
 0x19b   :  { %s123_s5 = spop %122 }
 0x19c   :  { %v103_v41 = vstv %s123_s5 }
 0x19d   :  { %v104_v42 = vsel %vm102_vm4, %v103_v41, 0.0 }
 0x19e   :  { %105 = vst [vmem:[#allocation7] sm:$0xff] %v104_v42 }
 0x19f   :  { %187 = shalt.err (!%p184_p6)
}
 0x1a0   :  { %s188_s9 = scalar_lea.hbm %s267_s2, 128 }
 0x1a1   :  { %p189_p7 = scmp.ne.s32.totalorder %s267_s2, %s188_s9  ;;  %p192_p8 = scmp.lt.u32.totalorder %s188_s9, %s267_s2 }
 0x1a3   :  { %p194_p9 = pnand %p192_p8, %p189_p7 }
 0x1a5   :  { %197 = shalt.err (!%p194_p9)
}
 0x1a6   :  { %115 = dma.vmem_to_hbm [thread:$0]  %s113_s4, 128, %s267_s2, [#allocation4]  }
 0x1a7   :  { %202 = dma.done.wait [#allocation4], 128  }
 0x1a8   :  { %203 = vsyncadd [#allocation4], 4294967168 }
 0x1a9   :  { %119 = vsyncpa [#allocation3], 1 }
 0x1aa   :  { %120 = vsyncpa [#allocation6], 1 }
 0x1ab   :  { %121 = vsyncpa [#allocation4], 1 }

</bundles_post_ra>
